<compile_context>
chip_gen: v7x
topology: tpu7x:2x2x1
jax: 0.10.0
libtpu: 0.0.40
codegen_flags: <defaults>
</compile_context>

<pallas_src>
import jax
import jax.numpy as jnp
from jax.experimental import pallas as pl
from jax.experimental.pallas import tpu as pltpu


_THRESHOLD = 100.0
_LANE_CANDIDATES = (2048, 1024, 512, 256, 128)


def _sign_kernel(x_ref, o_ref):
    x = x_ref[...]
    thr = jnp.asarray(_THRESHOLD, dtype=x.dtype)
    o_ref[...] = jnp.where(x >= thr, x, jnp.zeros_like(x))


def _tpu_budget():
    """Generation-aware (target_block_bytes, vmem_limit_bytes)."""
    vmem_cap = 64 * 1024 * 1024  # conservative default (v7x-class per-TC VMEM)
    try:
        vmem_cap = int(pltpu.get_tpu_info().vmem_capacity_bytes)
    except Exception:
        pass
    if vmem_cap <= 64 * 1024 * 1024:
        # v7x: 64 MiB physical VMEM per TC -> keep the pipeline footprint small.
        return 2 * 1024 * 1024, 32 * 1024 * 1024
    # v5e / v6e: 128 MiB VMEM -> larger tiles amortize ~0.35us/step overhead.
    return 4 * 1024 * 1024, 48 * 1024 * 1024


def _choose_2d_layout(total):
    """Lane-dense (rows, lanes) factorization of a 128-divisible total."""
    best = None
    for lanes in _LANE_CANDIDATES:
        if total % lanes == 0:
            rows = total // lanes
            if rows >= 8 and rows % 8 == 0:
                return rows, lanes        # lane-dense AND sublane-aligned
            if best is None:
                best = (rows, lanes)      # lane-dense, few rows (whole-array block)
    assert best is not None, "caller must guarantee total % 128 == 0"
    return best


def _choose_block_rows(rows, lanes, dtype_bytes, target_bytes):
    """Block row count: ~target bytes, multiple of 32, >=2 blocks for sizeable
    tensors (v7x dual-TC), preferring an even divisor of rows (no ragged tail)."""
    total_bytes = rows * lanes * dtype_bytes
    row_bytes = lanes * dtype_bytes
    ideal = max(32, (int(target_bytes // row_bytes) // 32) * 32)
    if ideal >= rows:
        # A single block would cover the whole array.  The grid axis is
        # "parallel" (sharded across v7x's 2 TensorCores), so for tensors
        # above ~1 MiB force at least two blocks instead of collapsing.
        if total_bytes > (1 << 20) and rows >= 64:
            ideal = max(32, ((rows // 2) // 32) * 32)
        else:
            return rows
    if ideal >= rows:
        return rows
    # Prefer a divisor of rows within ~+/-25% of the target so the last block
    # is not ragged (avoids masked stores / padded DMA on short grids).
    hi = (int(ideal * 1.25) // 32) * 32
    lo = max(32, (int(ideal * 0.75) // 32) * 32)
    for cand in range(hi, lo - 1, -32):
        if 0 < cand <= rows and rows % cand == 0:
            return cand
    return ideal


def _sign_2d(x2d, rows, lanes, target_block, vmem_limit, donate):
    dtype_bytes = jnp.dtype(x2d.dtype).itemsize
    block_rows = _choose_block_rows(rows, lanes, dtype_bytes, target_block)
    grid = (pl.cdiv(rows, block_rows),)
    total = rows * lanes
    return pl.pallas_call(
        _sign_kernel,
        out_shape=jax.ShapeDtypeStruct((rows, lanes), x2d.dtype),
        grid_spec=pltpu.PrefetchScalarGridSpec(
            num_scalar_prefetch=0,
            grid=grid,
            in_specs=[pl.BlockSpec((block_rows, lanes), lambda i: (i, 0))],
            out_specs=pl.BlockSpec((block_rows, lanes), lambda i: (i, 0)),
        ),
        compiler_params=pltpu.CompilerParams(
            dimension_semantics=("parallel",),
            vmem_limit_bytes=vmem_limit,
        ),
        cost_estimate=pl.CostEstimate(
            flops=total,
            transcendentals=0,
            bytes_accessed=2 * total * dtype_bytes,
        ),
        # Optional in-place semantics: halves peak HBM footprint when the
        # caller actually donates the input buffer.
        input_output_aliases={0: 0} if donate else {},
    )(x2d)


def sign_forward(x, donate=False):
    """Elementwise threshold: x where x >= 100.0, else 0 (sign_f.forward)."""
    orig_shape = x.shape
    total = int(x.size)
    if total == 0:
        return x
    thr = jnp.asarray(_THRESHOLD, dtype=x.dtype)
    target_block, vmem_limit = _tpu_budget()

    if total % 128 == 0:
        rows, lanes = _choose_2d_layout(total)
        out = _sign_2d(x.reshape(rows, lanes), rows, lanes,
                       target_block, vmem_limit, donate)
        return out.reshape(orig_shape)

    # Odd totals: lane-dense kernel on the largest 1024-multiple prefix;
    # tiny remainder finished with plain jnp.where (no lane-sparse vst.msk).
    main = (total // 1024) * 1024
    if main == 0:
        return jnp.where(x >= thr, x, jnp.zeros_like(x))
    flat = x.reshape(-1)
    head = flat[:main]
    rows, lanes = _choose_2d_layout(main)
    head_out = _sign_2d(head.reshape(rows, lanes), rows, lanes,
                        target_block, vmem_limit, False).reshape(-1)
    tail = flat[main:]
    tail_out = jnp.where(tail >= thr, tail, jnp.zeros_like(tail))
    return jnp.concatenate([head_out, tail_out]).reshape(orig_shape)


if __name__ == "__main__":
    key = jax.random.PRNGKey(0)

    # Small NCHW input consistent with the module usage.
    x = jax.random.uniform(
        key, (2, 4, 16, 16), dtype=jnp.float32, minval=0.0, maxval=200.0
    )
    y_ref = jnp.where(x >= 100.0, x, 0.0)
    y = jax.block_until_ready(sign_forward(x))
    assert y.shape == x.shape and y.dtype == x.dtype
    assert bool(jnp.allclose(y, y_ref)), "mismatch vs reference (NCHW case)"

    # Larger shape: exercises the lane-dense layout with a multi-block grid.
    x2 = jax.random.uniform(
        jax.random.PRNGKey(1), (8, 16, 64, 128), dtype=jnp.float32,
        minval=0.0, maxval=200.0,
    )
    y2 = jax.block_until_ready(sign_forward(x2))
    assert bool(jnp.allclose(y2, jnp.where(x2 >= 100.0, x2, 0.0))), \
        "mismatch vs reference (tiled case)"

    # Odd shape (total not a multiple of 128): exercises prefix + remainder.
    x3 = jax.random.uniform(
        jax.random.PRNGKey(2), (3, 5, 7, 11), dtype=jnp.float32,
        minval=0.0, maxval=200.0,
    )
    y3 = jax.block_until_ready(sign_forward(x3))
    assert bool(jnp.allclose(y3, jnp.where(x3 >= 100.0, x3, 0.0))), \
        "mismatch vs reference (odd-shape case)"

    # Tiny odd shape (< 1024 elements): pure-jnp fallback path.
    x4 = jax.random.uniform(
        jax.random.PRNGKey(3), (3, 7), dtype=jnp.float32,
        minval=0.0, maxval=200.0,
    )
    y4 = jax.block_until_ready(sign_forward(x4))
    assert bool(jnp.allclose(y4, jnp.where(x4 >= 100.0, x4, 0.0))), \
        "mismatch vs reference (tiny case)"

    print("KERNEL_OK")
</pallas_src>

<mosaic_0001>
module attributes {stable_mosaic.version = 11 : i64} {
  func.func @_sign_kernel(%arg0: i32, %arg1: memref<8x256xf32, #tpu.memory_space<vmem>>, %arg2: memref<8x256xf32, #tpu.memory_space<vmem>>) attributes {dimension_semantics = [#tpu.dimension_semantics<parallel>], iteration_bounds = array<i64: 1>, scalar_prefetch = 0 : i64, scratch_operands = 0 : i64, tpu.core_type = #tpu.core_type<tc>, window_params = [{transform_indices = @transform_0, window_bounds = array<i64: 8, 256>}, {transform_indices = @transform_1, window_bounds = array<i64: 8, 256>}]} {
    %c0 = arith.constant 0 : index
    %c0_0 = arith.constant 0 : index
    %0 = vector.load %arg1[%c0, %c0_0] : memref<8x256xf32, #tpu.memory_space<vmem>>, vector<8x256xf32>
    %cst = arith.constant 1.000000e+02 : f32
    %1 = vector.broadcast %cst : f32 to vector<8x256xf32>
    %2 = arith.cmpf oge, %0, %1 : vector<8x256xf32>
    %cst_1 = arith.constant 0.000000e+00 : f32
    %3 = vector.broadcast %cst_1 : f32 to vector<8x256xf32>
    %4 = arith.select %2, %0, %3 : vector<8x256xi1>, vector<8x256xf32>
    %c0_2 = arith.constant 0 : index
    %c0_3 = arith.constant 0 : index
    %5 = vector.load %arg2[%c0_2, %c0_3] : memref<8x256xf32, #tpu.memory_space<vmem>>, vector<8x256xf32>
    tpu.vector_store %arg2[%c0_2, %c0_3], %4 {strides = array<i32>} : memref<8x256xf32, #tpu.memory_space<vmem>>, vector<8x256xf32>,
    return
  }
  func.func @transform_0(%arg0: i32) -> (i32, i32) {
    %c0_i32 = arith.constant 0 : i32
    %c0_i32_0 = arith.constant 0 : i32
    return %arg0, %c0_i32 : i32, i32
  }
  func.func @transform_1(%arg0: i32) -> (i32, i32) {
    %c0_i32 = arith.constant 0 : i32
    %c0_i32_0 = arith.constant 0 : i32
    return %arg0, %c0_i32 : i32, i32
  }
}

</mosaic_0001>

<bundles_post_ra>
// kernel: tpu_custom_call.1
= control target key start
LH: loop header
LB: loop body
LE: loop exit
PB: predicated region body
PF: predicated region fallthrough
CT: control target
= control target key end

     0   :  { %6 = vsyncpa [#allocation3], 0  ;;  %s130_s0 = inlined_call_operand.hbm [shape: f32[8,256], index: 0, kind: input, shape index: {}]   ;;  %s131_s1 = inlined_call_operand.hbm [shape: f32[8,256], index: 1, kind: output, shape index: {}]  }
   0x1   :  { %7 = vsyncpa [#allocation4], 0  ;;  %s94_s6 = smov [#allocation2]   ;;  %s46_s10 = scalar_lea.hbm %s130_s0, 256 }
   0x2   :  { %s14_s7 = sshll.u32 %s94_s6, 4  ;;  %p47_p0 = scmp.ne.s32.totalorder %s130_s0, %s46_s10  ;;  %s15_s7 = int_to_ptr.vmem [resolvable:$true] %s14_s7 }
   0x3   :  { %p50_p1 = scmp.lt.u32.totalorder %s46_s10, %s130_s0 }
   0x5   :  { %p52_p2 = pnand %p50_p1, %p47_p0 }
   0x7   :  { %55 = shalt.err (!%p52_p2)
}
   0x8   :  { %s56_s15 = scalar_lea.vmem %s15_s7, 256  ;;  %p61_p4 = scmp.lt.s32.totalorder %s15_s7, %s15_s7 }
   0x9   :  { %p57_p3 = scmp.ne.s32.totalorder %s15_s7, %s56_s15  ;;  %p62_p5 = scmp.lt.s32.totalorder %s56_s15, %s56_s15 }
   0xb   :  { %p63_p6 = por %p62_p5, %p61_p4 }
   0xd   :  { %p64_p7 = pnand %p63_p6, %p57_p3 }
   0xf   :  { %67 = shalt.err (!%p64_p7)
}
  0x10   :  { %17 = dma.hbm_to_vmem [thread:$0]  %s130_s0, 256, %s15_s7, [#allocation3]  }
  0x11   :  { %90 = dma.done.wait [#allocation3], 256  }
  0x12   :  { %91 = vsyncadd [#allocation3], 4294967040  ;;  %s95_s18 = smov [#allocation5]   ;;  %v21_v0 = vld [vmem:[#allocation2] sm:$0xff]  ;;  %v22_v1 = vld [vmem:[#allocation2 + $0x8] sm:$0xff] }
  0x13   :  { %s35_s19 = sshll.u32 %s95_s18, 4  ;;  %vm23_vm0 = vcmp.ge.f32.partialorder %v21_v0, 100.0  ;;  %vm24_vm1 = vcmp.ge.f32.partialorder %v22_v1, 100.0  ;;  %s36_s19 = int_to_ptr.vmem [resolvable:$true] %s35_s19 }
  0x14   :  { %v25_v2 = vsel %vm23_vm0, %v21_v0, 0.0  ;;  %v26_v3 = vsel %vm24_vm1, %v22_v1, 0.0  ;;  %s68_s20 = scalar_lea.vmem %s36_s19, 256  ;;  %p73_p9 = scmp.lt.s32.totalorder %s36_s19, %s36_s19 }
  0x15   :  { %27 = vst [vmem:[#allocation5] sm:$0xff] %v25_v2  ;;  %28 = vst [vmem:[#allocation5 + $0x8] sm:$0xff] %v26_v3  ;;  %p69_p8 = scmp.ne.s32.totalorder %s36_s19, %s68_s20  ;;  %p74_p10 = scmp.lt.s32.totalorder %s68_s20, %s68_s20 }
  0x17   :  { %p75_p11 = por %p74_p10, %p73_p9 }
  0x19   :  { %p76_p12 = pnand %p75_p11, %p69_p8 }
  0x1b   :  { %79 = shalt.err (!%p76_p12)
}
  0x1c   :  { %s80_s22 = scalar_lea.hbm %s131_s1, 256 }
  0x1d   :  { %p81_p13 = scmp.ne.s32.totalorder %s131_s1, %s80_s22  ;;  %p84_p0 = scmp.lt.u32.totalorder %s80_s22, %s131_s1 }
  0x1f   :  { %p86_p1 = pnand %p84_p0, %p81_p13 }
  0x21   :  { %89 = shalt.err (!%p86_p1)
}
  0x22   :  { %38 = dma.vmem_to_hbm [thread:$0]  %s36_s19, 256, %s131_s1, [#allocation4]  }
  0x23   :  { %92 = dma.done.wait [#allocation4], 256  }
  0x24   :  { %93 = vsyncadd [#allocation4], 4294967040 }
  0x25   :  { %42 = vsyncpa [#allocation3], 1 }
  0x26   :  { %43 = vsyncpa [#allocation4], 1 }

</bundles_post_ra>
